<compile_context>
chip_gen: v6e
topology: v6e:2x2x1
jax: 0.10.0
libtpu: 0.0.40
codegen_flags: <defaults>
</compile_context>

<pallas_src>
import jax
import jax.numpy as jnp
from jax.experimental import pallas as pl
from jax.experimental.pallas import tpu as pltpu

# Per-channel ImageNet statistics from the PyTorch module.
MEAN = (0.485, 0.456, 0.406)
STD = (0.229, 0.224, 0.225)

# Fold into a single FMA:  (x - mean) / std  ==  x * (1/std) + (-mean/std)
_SCALE = tuple(1.0 / s for s in STD)
_BIAS = tuple(-m / s for m, s in zip(MEAN, STD))
_C = len(MEAN)

_LANE = 128     # vreg lane width -> unmasked full-width stores
_TR_MAX = 512   # rows per block: 3*512*128*4 B = 768 KiB


def _normalize_kernel(x_ref, o_ref):
    """Streaming per-channel FMA; scale/bias are compile-time scalar constants."""
    # Block is (C, tr, 128). Unrolled channel loop keeps the constants as scalar
    # immediates (no operand streams, no per-step (C,1,1) broadcasts).
    for c in range(_C):
        o_ref[c, :, :] = x_ref[c, :, :] * _SCALE[c] + _BIAS[c]


def _choose_tr(rows):
    """Row tile: multiple of 8 (or the full extent), capped at _TR_MAX, sized so
    the grid has >= 2 steps whenever possible (DMA overlap; lets the 'parallel'
    axis actually shard across v7x's two TensorCores)."""
    if rows <= 8:
        return rows                                  # full-extent block (tiny images)
    half = (rows + 1) // 2
    return min(_TR_MAX, ((half + 7) // 8) * 8)


@jax.jit
def normalize_image(x):
    """x: (1, C, H, W) float32 in [0, 1]. Returns (x - mean[c]) / std[c]."""
    N, C, H, W = x.shape
    assert N == 1 and C == _C, "module loads a single RGB image (unsqueeze(0))"

    x = x.astype(jnp.float32)
    hw = H * W

    # Lane-dense layout: flatten spatial dims, pad up to a multiple of 128 so all
    # stores are full-width vst (512x512 and the common cases need no padding).
    hw_pad = pl.cdiv(hw, _LANE) * _LANE
    flat = x.reshape(C, hw)
    if hw_pad != hw:
        flat = jnp.pad(flat, ((0, 0), (0, hw_pad - hw)))
    rows = hw_pad // _LANE
    x3 = flat.reshape(C, rows, _LANE)

    tr = _choose_tr(rows)
    grid = (pl.cdiv(rows, tr),)   # ragged last block handled by Pallas masking

    out3 = pl.pallas_call(
        _normalize_kernel,
        out_shape=jax.ShapeDtypeStruct((C, rows, _LANE), jnp.float32),
        grid=grid,
        in_specs=[pl.BlockSpec((C, tr, _LANE), lambda i: (0, i, 0))],
        out_specs=pl.BlockSpec((C, tr, _LANE), lambda i: (0, i, 0)),
        compiler_params=pltpu.CompilerParams(
            dimension_semantics=("parallel",),
        ),
    )(x3)

    return out3.reshape(C, hw_pad)[:, :hw].reshape(N, C, H, W)


class GeneratedImage:
    """JAX/Pallas analogue of the PyTorch GeneratedImage module.

    The 'parameter' is the normalized image tensor; forward() returns it.
    """

    def __init__(self, raw_image_01):
        # raw_image_01: (1, 3, H, W) float32 in [0, 1] — stand-in for the
        # transforms.Resize + ToTensor output of content.jpg.
        # TODO(synk): the real module does PIL file I/O + Resize((512,512));
        # no file I/O here — the [0,1] image tensor is supplied by the caller.
        self.params = normalize_image(raw_image_01)

    def forward(self):
        return self.params

    __call__ = forward


if __name__ == "__main__":
    key = jax.random.PRNGKey(0)
    # Small shape consistent with the module: (1, 3, H, W); real module uses
    # 512x512, 64x64 keeps the example small while exercising a multi-step grid.
    raw_img = jax.random.uniform(
        key, (1, 3, 64, 64), dtype=jnp.float32, minval=0.0, maxval=1.0
    )

    model = GeneratedImage(raw_img)
    out = jax.block_until_ready(model())

    mean = jnp.array(MEAN, jnp.float32).reshape(1, 3, 1, 1)
    std = jnp.array(STD, jnp.float32).reshape(1, 3, 1, 1)
    ref = (raw_img - mean) / std
    assert out.shape == raw_img.shape
    assert out.dtype == jnp.float32
    assert jnp.allclose(out, ref, atol=1e-5, rtol=1e-5)

    # Also exercise the padded path (H*W not a multiple of 128).
    raw_odd = jax.random.uniform(
        jax.random.PRNGKey(1), (1, 3, 20, 20), dtype=jnp.float32
    )
    out_odd = jax.block_until_ready(normalize_image(raw_odd))
    ref_odd = (raw_odd - mean) / std
    assert jnp.allclose(out_odd, ref_odd, atol=1e-5, rtol=1e-5)

    print("KERNEL_OK")
</pallas_src>

<mosaic_0001>
module attributes {stable_mosaic.version = 11 : i64} {
  func.func @_normalize_kernel(%arg0: i32, %arg1: memref<3x16x128xf32, #tpu.memory_space<vmem>>, %arg2: memref<3x16x128xf32, #tpu.memory_space<vmem>>) attributes {dimension_semantics = [#tpu.dimension_semantics<parallel>], iteration_bounds = array<i64: 2>, scalar_prefetch = 0 : i64, scratch_operands = 0 : i64, tpu.core_type = #tpu.core_type<tc>, window_params = [{transform_indices = @transform_0, window_bounds = array<i64: 3, 16, 128>}, {transform_indices = @transform_1, window_bounds = array<i64: 3, 16, 128>}]} {
    %c0 = arith.constant 0 : index
    %c0_0 = arith.constant 0 : index
    %c0_1 = arith.constant 0 : index
    %0 = vector.load %arg1[%c0, %c0_0, %c0_1] : memref<3x16x128xf32, #tpu.memory_space<vmem>>, vector<1x16x128xf32>
    %1 = vector.shape_cast %0 : vector<1x16x128xf32> to vector<16x128xf32>
    %cst = arith.constant 4.36681223 : f32
    %2 = vector.broadcast %cst : f32 to vector<16x128xf32>
    %3 = arith.mulf %1, %2 : vector<16x128xf32>
    %cst_2 = arith.constant -2.11790395 : f32
    %4 = vector.broadcast %cst_2 : f32 to vector<16x128xf32>
    %5 = arith.addf %3, %4 : vector<16x128xf32>
    %c0_3 = arith.constant 0 : index
    %c0_4 = arith.constant 0 : index
    %c0_5 = arith.constant 0 : index
    %6 = vector.load %arg2[%c0_3, %c0_4, %c0_5] : memref<3x16x128xf32, #tpu.memory_space<vmem>>, vector<1x16x128xf32>
    %7 = vector.shape_cast %6 : vector<1x16x128xf32> to vector<16x128xf32>
    %8 = vector.shape_cast %5 : vector<16x128xf32> to vector<1x16x128xf32>
    tpu.vector_store %arg2[%c0_3, %c0_4, %c0_5], %8 {strides = array<i32>} : memref<3x16x128xf32, #tpu.memory_space<vmem>>, vector<1x16x128xf32>,
    %c1 = arith.constant 1 : index
    %c0_6 = arith.constant 0 : index
    %c0_7 = arith.constant 0 : index
    %9 = vector.load %arg1[%c1, %c0_6, %c0_7] : memref<3x16x128xf32, #tpu.memory_space<vmem>>, vector<1x16x128xf32>
    %10 = vector.shape_cast %9 : vector<1x16x128xf32> to vector<16x128xf32>
    %cst_8 = arith.constant 4.46428585 : f32
    %11 = vector.broadcast %cst_8 : f32 to vector<16x128xf32>
    %12 = arith.mulf %10, %11 : vector<16x128xf32>
    %cst_9 = arith.constant -2.03571439 : f32
    %13 = vector.broadcast %cst_9 : f32 to vector<16x128xf32>
    %14 = arith.addf %12, %13 : vector<16x128xf32>
    %c1_10 = arith.constant 1 : index
    %c0_11 = arith.constant 0 : index
    %c0_12 = arith.constant 0 : index
    %15 = vector.load %arg2[%c1_10, %c0_11, %c0_12] : memref<3x16x128xf32, #tpu.memory_space<vmem>>, vector<1x16x128xf32>
    %16 = vector.shape_cast %15 : vector<1x16x128xf32> to vector<16x128xf32>
    %17 = vector.shape_cast %14 : vector<16x128xf32> to vector<1x16x128xf32>
    tpu.vector_store %arg2[%c1_10, %c0_11, %c0_12], %17 {strides = array<i32>} : memref<3x16x128xf32, #tpu.memory_space<vmem>>, vector<1x16x128xf32>,
    %c2 = arith.constant 2 : index
    %c0_13 = arith.constant 0 : index
    %c0_14 = arith.constant 0 : index
    %18 = vector.load %arg1[%c2, %c0_13, %c0_14] : memref<3x16x128xf32, #tpu.memory_space<vmem>>, vector<1x16x128xf32>
    %19 = vector.shape_cast %18 : vector<1x16x128xf32> to vector<16x128xf32>
    %cst_15 = arith.constant 4.44444466 : f32
    %20 = vector.broadcast %cst_15 : f32 to vector<16x128xf32>
    %21 = arith.mulf %19, %20 : vector<16x128xf32>
    %cst_16 = arith.constant -1.80444443 : f32
    %22 = vector.broadcast %cst_16 : f32 to vector<16x128xf32>
    %23 = arith.addf %21, %22 : vector<16x128xf32>
    %c2_17 = arith.constant 2 : index
    %c0_18 = arith.constant 0 : index
    %c0_19 = arith.constant 0 : index
    %24 = vector.load %arg2[%c2_17, %c0_18, %c0_19] : memref<3x16x128xf32, #tpu.memory_space<vmem>>, vector<1x16x128xf32>
    %25 = vector.shape_cast %24 : vector<1x16x128xf32> to vector<16x128xf32>
    %26 = vector.shape_cast %23 : vector<16x128xf32> to vector<1x16x128xf32>
    tpu.vector_store %arg2[%c2_17, %c0_18, %c0_19], %26 {strides = array<i32>} : memref<3x16x128xf32, #tpu.memory_space<vmem>>, vector<1x16x128xf32>,
    return
  }
  func.func @transform_0(%arg0: i32) -> (i32, i32, i32) {
    %c0_i32 = arith.constant 0 : i32
    %c0_i32_0 = arith.constant 0 : i32
    %c0_i32_1 = arith.constant 0 : i32
    return %c0_i32, %arg0, %c0_i32_0 : i32, i32, i32
  }
  func.func @transform_1(%arg0: i32) -> (i32, i32, i32) {
    %c0_i32 = arith.constant 0 : i32
    %c0_i32_0 = arith.constant 0 : i32
    %c0_i32_1 = arith.constant 0 : i32
    return %c0_i32, %arg0, %c0_i32_0 : i32, i32, i32
  }
}

</mosaic_0001>

<bundles_post_ra>
// kernel: normalize_image.1
= control target key start
LH: loop header
LB: loop body
LE: loop exit
PB: predicated region body
PF: predicated region fallthrough
CT: control target
= control target key end

     0   :  { %s397_s6 = smov 0   ;;  %s399_s7 = smov 0   ;;  %s457_s0 = inlined_call_operand.vmem [shape: f32[3,32,128], index: 0, kind: input, shape index: {}]   ;;  %s458_s1 = inlined_call_operand.vmem [shape: f32[3,32,128], index: 1, kind: output, shape index: {}]  }
   0x1   :  { %s401_s8 = smov 0  }
   0x2 LB: > { %s316_s9 = sadd.s32 4294967295, %s385_s8   ;;  %s414_s10 = sadd.s32 1, %s385_s8   ;;  %s385_s8 = sphi %s401_s8, %s462_s8   ;;  %s381_s7 = sphi %s399_s7, %s461_s7   ;;  %s377_s6 = sphi %s397_s6, %s460_s6  }
   0x3   : > { %s15_s11 = ssub.s32 %s385_s8, %s414_s10  ;;  %s18_s12 = sadd.s32 1, %s381_s7 }
   0x4   : > { %p16_p0 = scmp.eq.s32.totalorder %s15_s11, 0  ;;  %p25_p1 = scmp.ne.s32.totalorder %s381_s7, %s377_s6 }
   0x5   : > { %p26_p2 = scmp.eq.s32.totalorder %s385_s8, 0  ;;  %p55_p3 = scmp.eq.s32.totalorder %s316_s9, 1 }
   0x6   : > { %s425_s13 = scalar_select %p16_p0, %s381_s7, %s18_s12  }
   0x7   : > { %p27_p4 = por %p26_p2, %p25_p1  ;;  %p427_p5 = por %p55_p3, %p25_p1 }
   0x8   : > { %p319_p6 = scmp.ge.s32.totalorder %s385_s8, 2 }
   0xa   : > { %77 = sbr.rel (%p319_p6) target bundleno = 22 (0x16), region = 16 }
   0xf   : > { %80 = sbr.rel (!%p27_p4) target bundleno = 22 (0x16), region = 20  ;;  %s82_s15 = sand.u32 (%p27_p4), 1, %s381_s7  }
  0x10   : > { %s335_s16 = sshll.u32 (%p27_p4), %s385_s8, 4  ;;  %s337_s17 = smul.u32 (%p27_p4), 48, %s82_s15 }
  0x11   : > { %s87_s20 = scalar_lea.vmem (%p27_p4), %s457_s0, %s335_s16 }
  0x12   : > { %v126_v0 = vld [vmem:[%s87_s20] sm:$0xff] (%p27_p4)  ;;  %v128_v1 = vld [vmem:[%s87_s20 + $0x8] sm:$0xff] (%p27_p4)  ;;  %s84_s21 = scalar_lea.vmem (%p27_p4), [#allocation2], %s337_s17 }
  0x13   : > { %v130_v2 = vld [vmem:[%s87_s20 + $0x20] sm:$0xff] (%p27_p4)  ;;  %v132_v3 = vld [vmem:[%s87_s20 + $0x28] sm:$0xff] (%p27_p4)  ;;  %127 = vst [vmem:[%s84_s21] sm:$0xff] (%p27_p4), %v126_v0  ;;  %129 = vst [vmem:[%s84_s21 + $0x8] sm:$0xff] (%p27_p4), %v128_v1 }
  0x14   : > { %v134_v4 = vld [vmem:[%s87_s20 + $0x40] sm:$0xff]  ;;  %v136_v5 = vld [vmem:[%s87_s20 + $0x48] sm:$0xff]  ;;  %131 = vst [vmem:[%s84_s21 + $0x10] sm:$0xff] %v130_v2  ;;  %133 = vst [vmem:[%s84_s21 + $0x18] sm:$0xff] %v132_v3 }
  0x15   : > { %135 = vst [vmem:[%s84_s21 + $0x20] sm:$0xff] %v134_v4  ;;  %137 = vst [vmem:[%s84_s21 + $0x28] sm:$0xff] %v136_v5 }
  0x16 PF: > { %p322_p7 = scmp.ge.s32.totalorder %s385_s8, 1  ;;  %p142_p8 = scmp.lt.s32.totalorder %s385_s8, 3 }
  0x18   : > { %p143_p9 = pnand %p322_p7, %p142_p8 }
  0x19   : > { %s149_s22 = sand.u32 (!%p143_p9), 1, %s377_s6  }
  0x1a   : > { %146 = sbr.rel (%p143_p9) target bundleno = 49 (0x31), region = 58 }
  0x1b   : > { %s338_s23 = smul.u32 (!%p143_p9), 48, %s149_s22 }
  0x1d   : > { %s151_s24 = scalar_lea.vmem (!%p143_p9), [#allocation2], %s338_s23  ;;  %s166_s25 = scalar_lea.vmem (!%p143_p9), [#allocation3], %s338_s23 }
  0x1f   : > { %v169_v6 = vld [vmem:[%s151_s24] sm:$0xff]  ;;  %v170_v7 = vld [vmem:[%s151_s24 + $0x8] sm:$0xff]  ;;  %v323_v8 = vld [vmem:[%s151_s24 + $0x10] sm:$0xff]  ;;  %s336_s26 = sshll.u32 (%p427_p5), %s316_s9, 4 }
  0x20   : > { %v171_v9 = vmul.f32 4.366812, %v169_v6  ;;  %v172_v10 = vmul.f32 4.366812, %v170_v7  ;;  %v180_v11 = vmul.f32 4.464286, %v323_v8  ;;  %s206_s29 = scalar_lea.vmem (%p427_p5), %s458_s1, %s336_s26 }
  0x21   : > { %v324_v12 = vld [vmem:[%s151_s24 + $0x18] sm:$0xff]  ;;  %v327_v13 = vld [vmem:[%s151_s24 + $0x20] sm:$0xff]  ;;  %v328_v14 = vld [vmem:[%s151_s24 + $0x28] sm:$0xff] }
  0x22   : > { %v173_v15 = vadd.f32 -2.117904, %v171_v9  ;;  %v174_v16 = vadd.f32 -2.117904, %v172_v10  ;;  %v182_v17 = vadd.f32 -2.0357144, %v180_v11 }
  0x23   : > { %v181_v18 = vmul.f32 4.464286, %v324_v12  ;;  %v190_v19 = vmul.f32 4.4444447, %v327_v13  ;;  %v191_v20 = vmul.f32 4.4444447, %v328_v14 }
  0x24   : > { %175 = vst [vmem:[%s166_s25] sm:$0xff] %v173_v15  ;;  %176 = vst [vmem:[%s166_s25 + $0x8] sm:$0xff] %v174_v16  ;;  %203 = sbr.rel (!%p427_p5) target bundleno = 49 (0x31), region = 66 }
  0x25   : > { %325 = vst [vmem:[%s166_s25 + $0x10] sm:$0xff] %v182_v17  ;;  %v183_v21 = vadd.f32 -2.0357144, %v181_v18  ;;  %v192_v22 = vadd.f32 -1.8044444, %v190_v19 }
  0x26   : > { %v193_v23 = vadd.f32 -1.8044444, %v191_v20 }
  0x27   : > { %326 = vst [vmem:[%s166_s25 + $0x18] sm:$0xff] %v183_v21  ;;  %329 = vst [vmem:[%s166_s25 + $0x20] sm:$0xff] %v192_v22 }
  0x28   : > { %330 = vst [vmem:[%s166_s25 + $0x28] sm:$0xff] %v193_v23 }
  0x2b   : > { %v245_v24 = vld [vmem:[%s166_s25] sm:$0xff]  ;;  %v247_v25 = vld [vmem:[%s166_s25 + $0x8] sm:$0xff] }
  0x2c   : > { %v249_v26 = vld [vmem:[%s166_s25 + $0x10] sm:$0xff]  ;;  %246 = vst [vmem:[%s206_s29] sm:$0xff] %v245_v24  ;;  %248 = vst [vmem:[%s206_s29 + $0x8] sm:$0xff] %v247_v25 }
  0x2d   : > { %250 = vst [vmem:[%s206_s29 + $0x20] sm:$0xff] %v249_v26 }
  0x2e   : > { %v251_v27 = vld [vmem:[%s166_s25 + $0x18] sm:$0xff]  ;;  %v253_v28 = vld [vmem:[%s166_s25 + $0x20] sm:$0xff] }
  0x2f   : > { %v255_v29 = vld [vmem:[%s166_s25 + $0x28] sm:$0xff]  ;;  %252 = vst [vmem:[%s206_s29 + $0x28] sm:$0xff] %v251_v27  ;;  %254 = vst [vmem:[%s206_s29 + $0x40] sm:$0xff] %v253_v28 }
  0x30   : > { %256 = vst [vmem:[%s206_s29 + $0x48] sm:$0xff] %v255_v29 }
  0x31 PF: > { %p8_p10 = scmp.ge.s32.totalorder %s414_s10, 4   ;;  %s460_s6 = smov %s381_s7 }
  0x32   : > { %s461_s7 = smov %s425_s13  ;;  %s462_s8 = smov %s414_s10 }
  0x33   :  { %10 = sbr.rel (!%p8_p10) target bundleno = 2 (0x2), region = 139 }

</bundles_post_ra>
